<compile_context>
chip_gen: v6e
topology: v6e:2x2x1
jax: 0.10.0
libtpu: 0.0.40
codegen_flags: <defaults>
</compile_context>

<pallas_src>
import jax
import jax.numpy as jnp
from jax import lax
from jax.experimental import pallas as pl
from jax.experimental.pallas import tpu as pltpu

# ----------------------------- config ---------------------------------------
B = 2          # batch
C = 4          # input channels
H = W = 16     # spatial
F = 32         # hidden channels of the head
K = 1          # anchors per spatial cell
NUM_CLASSES = 8
M = 4          # max annotations per image (padded with -1)
ALPHA = 0.25
GAMMA = 2.0    # static; the kernel uses an explicit square instead of power()

A_TOTAL = H * W * K                 # total anchors (lane axis)
RHEAD = NUM_CLASSES * K + 4 * K     # merged head rows: [cls (NC) | reg (4)]


# -------------------- fused detection-head + focal-loss kernel ---------------
def fused_det_loss_kernel(x_ref, w1_ref, b1_ref, wh_ref, bh_ref,
                          geom_ref, annot_ref, cls_out_ref, reg_out_ref):
    # One image per grid step. Anchor axis A lives on lanes everywhere.
    a_n = geom_ref.shape[1]          # number of anchors
    m = annot_ref.shape[1]           # max annotations per image
    nc = wh_ref.shape[0] - 4         # number of classes

    # ---- detection "model": 1x1-conv backbone + merged 1x1-conv heads (MXU)
    x = x_ref[0]                                                    # (C, A)
    h = jnp.dot(w1_ref[...], x, preferred_element_type=jnp.float32) + b1_ref[...]
    h = jnp.maximum(h, 0.0)                                         # (F, A)
    heads = (jnp.dot(wh_ref[...], h, preferred_element_type=jnp.float32)
             + bh_ref[...])                                         # (NC+4, A)
    logits = heads[0:nc, :]                                         # (NC, A)
    regression = heads[nc:nc + 4, :]                                # (4, A) (dy,dx,dh,dw)

    classification = jnp.clip(jax.nn.sigmoid(logits), 1e-4, 1.0 - 1e-4)

    # ---- anchor geometry, precomputed lane-dense in the wrapper: each (1, A)
    geom = geom_ref[...]
    a_x1 = geom[0:1]; a_y1 = geom[1:2]; a_x2 = geom[2:3]; a_y2 = geom[3:4]
    a_cx = geom[4:5]; a_cy = geom[5:6]
    inv_aw = geom[6:7]; inv_ah = geom[7:8]; a_area = geom[8:9]

    # ---- annotations for this image: (M, 5) [x1, y1, x2, y2, cls], -1 padded
    annot = annot_ref[0]
    b_x1 = annot[:, 0:1]; b_y1 = annot[:, 1:2]
    b_x2 = annot[:, 2:3]; b_y2 = annot[:, 3:4]; b_cls = annot[:, 4:5]
    valid = b_cls != -1.0                                           # (M, 1)

    # ---- IoU between every anchor and every (valid) annotation: (M, A)
    area = (b_x2 - b_x1) * (b_y2 - b_y1)
    iw = jnp.maximum(jnp.minimum(a_x2, b_x2) - jnp.maximum(a_x1, b_x1), 0.0)
    ih = jnp.maximum(jnp.minimum(a_y2, b_y2) - jnp.maximum(a_y1, b_y1), 0.0)
    inter = iw * ih
    ua = jnp.maximum(a_area + area - inter, 1e-8)
    iou = jnp.where(valid, inter / ua, -1.0)     # padded rows can never be max

    iou_max = jnp.max(iou, axis=0, keepdims=True)                   # (1, A)
    m_iota = lax.broadcasted_iota(jnp.int32, (m, a_n), 0)
    argmax = jnp.min(jnp.where(iou == iou_max, m_iota, m),
                     axis=0, keepdims=True)                         # (1, A)
    onehot = (m_iota == argmax).astype(jnp.float32)                 # (M, A)

    def gather(col):  # (M, 1) -> (1, A): bbox_annotation[IoU_argmax]
        return jnp.sum(onehot * col, axis=0, keepdims=True)

    as_x1 = gather(b_x1); as_y1 = gather(b_y1)
    as_x2 = gather(b_x2); as_y2 = gather(b_y2); as_cls = gather(b_cls)

    pos = iou_max >= 0.5                                            # (1, A)
    neg = iou_max < 0.4
    num_pos = jnp.sum(pos.astype(jnp.float32))                      # scalar

    # ---- classification focal loss
    cls_iota = lax.broadcasted_iota(jnp.int32, (nc, a_n), 0)
    cls_onehot = cls_iota == as_cls.astype(jnp.int32)               # (NC, A)
    targets = jnp.where(pos, jnp.where(cls_onehot, 1.0, 0.0),
                        jnp.where(neg, 0.0, -1.0))
    alpha_factor = jnp.where(targets == 1.0, ALPHA, 1.0 - ALPHA)
    fw = jnp.where(targets == 1.0, 1.0 - classification, classification)
    focal_weight = alpha_factor * fw * fw          # gamma == 2 -> square, no power()
    bce = -(targets * jnp.log(classification)
            + (1.0 - targets) * jnp.log(1.0 - classification))
    cls_loss = jnp.where(targets != -1.0, focal_weight * bce, 0.0)
    cls_per_img = jnp.sum(cls_loss) / jnp.maximum(num_pos, 1.0)

    # ---- regression smooth-L1 (beta = 1/9) on positives, targets (dy,dx,dh,dw)
    gt_w = as_x2 - as_x1
    gt_h = as_y2 - as_y1
    gt_cx = as_x1 + 0.5 * gt_w
    gt_cy = as_y1 + 0.5 * gt_h
    gt_w = jnp.maximum(gt_w, 1.0)
    gt_h = jnp.maximum(gt_h, 1.0)
    t_dy = (gt_cy - a_cy) * inv_ah
    t_dx = (gt_cx - a_cx) * inv_aw
    t_dh = jnp.log(gt_h * inv_ah)
    t_dw = jnp.log(gt_w * inv_aw)

    def smooth_l1(d):
        return jnp.where(d <= 1.0 / 9.0, 0.5 * 9.0 * d * d, d - 0.5 / 9.0)

    reg_err = (smooth_l1(jnp.abs(t_dy - regression[0:1, :]))
               + smooth_l1(jnp.abs(t_dx - regression[1:2, :]))
               + smooth_l1(jnp.abs(t_dh - regression[2:3, :]))
               + smooth_l1(jnp.abs(t_dw - regression[3:4, :])))     # (1, A)
    reg_sum = jnp.sum(jnp.where(pos, reg_err, 0.0))
    reg_per_img = jnp.where(num_pos > 0.0,
                            reg_sum / jnp.maximum(4.0 * num_pos, 1.0), 0.0)

    # Lane-aligned per-image outputs (broadcast the scalar across 128 lanes so
    # the store is a single unmasked vst).
    cls_out_ref[...] = jnp.broadcast_to(cls_per_img, (1, 1, 128))
    reg_out_ref[...] = jnp.broadcast_to(reg_per_img, (1, 1, 128))
    # TODO(synk): the PyTorch branch for images with zero valid annotations
    # (negatives-only focal loss, reg loss = 0) is not implemented; inputs are
    # assumed to contain at least one valid box per image.
    # TODO(synk): for real detector sizes (A ~ 1e5) add a lane-tiled grid over
    # the anchor axis with scratch accumulators to stay inside v7x's 64 MiB VMEM.


# --------------------------- ModelWithLoss.forward --------------------------
def make_anchor_geometry(anchors):
    # anchors: (A, 4) [y1, x1, y2, x2]  ->  (9, A) lane-dense geometry rows:
    # [x1, y1, x2, y2, cx, cy, 1/w, 1/h, area]
    a_y1 = anchors[:, 0]; a_x1 = anchors[:, 1]
    a_y2 = anchors[:, 2]; a_x2 = anchors[:, 3]
    a_w = a_x2 - a_x1
    a_h = a_y2 - a_y1
    a_cx = a_x1 + 0.5 * a_w
    a_cy = a_y1 + 0.5 * a_h
    return jnp.stack([a_x1, a_y1, a_x2, a_y2, a_cx, a_cy,
                      1.0 / a_w, 1.0 / a_h, a_w * a_h], axis=0)


@jax.jit
def model_with_loss(imgs, annotations, anchors, params):
    b, c, h, w = imgs.shape
    a = h * w * K
    # NCHW -> (B, C, A): pure reshape, anchor index a = y*W + x (matches anchors)
    x = imgs.reshape(b, c, a)

    w1, b1, wr, br, wc, bc = params
    w1_t = w1.T                                        # (F, C)
    b1_t = b1.reshape(-1, 1)                           # (F, 1)
    wh_t = jnp.concatenate([wc, wr], axis=1).T         # (NC+4, F): [cls | reg]
    bh_t = jnp.concatenate([bc, br], axis=1).reshape(-1, 1)   # (NC+4, 1)
    geom = make_anchor_geometry(anchors)               # (9, A)

    f = w1_t.shape[0]
    rhead = wh_t.shape[0]
    m = annotations.shape[1]

    cls_out, reg_out = pl.pallas_call(
        fused_det_loss_kernel,
        grid=(b,),
        in_specs=[
            pl.BlockSpec((1, c, a), lambda i: (i, 0, 0)),      # x (per image)
            pl.BlockSpec((f, c), lambda i: (0, 0)),            # w1_t
            pl.BlockSpec((f, 1), lambda i: (0, 0)),            # b1_t
            pl.BlockSpec((rhead, f), lambda i: (0, 0)),        # wh_t
            pl.BlockSpec((rhead, 1), lambda i: (0, 0)),        # bh_t
            pl.BlockSpec((9, a), lambda i: (0, 0)),            # anchor geometry
            pl.BlockSpec((1, m, 5), lambda i: (i, 0, 0)),      # annotations (per image)
        ],
        out_specs=(
            pl.BlockSpec((1, 1, 128), lambda i: (i, 0, 0)),
            pl.BlockSpec((1, 1, 128), lambda i: (i, 0, 0)),
        ),
        out_shape=(jax.ShapeDtypeStruct((b, 1, 128), jnp.float32),
                   jax.ShapeDtypeStruct((b, 1, 128), jnp.float32)),
        compiler_params=pltpu.CompilerParams(
            dimension_semantics=("parallel",)),
    )(x, w1_t, b1_t, wh_t, bh_t, geom, annotations)

    # batch mean (keepdim -> shape (1,)), same as torch.stack(...).mean(0, keepdim=True)
    cls_loss = jnp.mean(cls_out[:, 0, 0]).reshape(1)
    reg_loss = jnp.mean(reg_out[:, 0, 0]).reshape(1)
    return cls_loss, reg_loss


# ------------------------------- setup helpers -------------------------------
def make_anchors(h, w, stride=1.0, size=4.0):
    ys = (jnp.arange(h, dtype=jnp.float32) + 0.5) * stride
    xs = (jnp.arange(w, dtype=jnp.float32) + 0.5) * stride
    cy, cx = jnp.meshgrid(ys, xs, indexing="ij")
    cy = cy.reshape(-1)
    cx = cx.reshape(-1)
    half = size / 2.0
    # [y1, x1, y2, x2]
    return jnp.stack([cy - half, cx - half, cy + half, cx + half], axis=1)


def init_params(key):
    k1, k2, k3 = jax.random.split(key, 3)
    w1 = jax.random.normal(k1, (C, F), jnp.float32) * 0.1
    b1 = jnp.zeros((1, F), jnp.float32)
    wr = jax.random.normal(k2, (F, 4 * K), jnp.float32) * 0.1
    br = jnp.zeros((1, 4 * K), jnp.float32)
    wc = jax.random.normal(k3, (F, NUM_CLASSES * K), jnp.float32) * 0.1
    bc = jnp.full((1, NUM_CLASSES * K), -2.0, jnp.float32)  # prior-like bias
    return (w1, b1, wr, br, wc, bc)


if __name__ == "__main__":
    key = jax.random.PRNGKey(0)
    k_img, k_par = jax.random.split(key)

    imgs = jax.random.normal(k_img, (B, C, H, W), jnp.float32)
    params = init_params(k_par)
    anchors = make_anchors(H, W)                       # (A_TOTAL, 4)

    # annotations: (B, M, 5) = [x1, y1, x2, y2, class], padded with -1 rows
    annotations = jnp.array(
        [
            [[2.0, 3.0, 6.0, 7.0, 1.0],
             [9.0, 9.0, 12.5, 12.5, 3.0],
             [-1.0, -1.0, -1.0, -1.0, -1.0],
             [-1.0, -1.0, -1.0, -1.0, -1.0]],
            [[1.0, 1.0, 4.5, 4.5, 0.0],
             [5.0, 8.0, 9.0, 11.5, 5.0],
             [10.0, 2.0, 13.5, 6.0, 7.0],
             [-1.0, -1.0, -1.0, -1.0, -1.0]],
        ],
        dtype=jnp.float32,
    )

    cls_loss, reg_loss = model_with_loss(imgs, annotations, anchors, params)
    jax.block_until_ready((cls_loss, reg_loss))
    print("KERNEL_OK")
</pallas_src>

<mosaic_0001>
module attributes {stable_mosaic.version = 11 : i64} {
  func.func @fused_det_loss_kernel(%arg0: i32, %arg1: memref<1x4x256xf32, #tpu.memory_space<vmem>>, %arg2: memref<32x4xf32, #tpu.memory_space<vmem>>, %arg3: memref<32x1xf32, #tpu.memory_space<vmem>>, %arg4: memref<12x32xf32, #tpu.memory_space<vmem>>, %arg5: memref<12x1xf32, #tpu.memory_space<vmem>>, %arg6: memref<9x256xf32, #tpu.memory_space<vmem>>, %arg7: memref<1x4x5xf32, #tpu.memory_space<vmem>>, %arg8: memref<1x1x128xf32, #tpu.memory_space<vmem>>, %arg9: memref<1x1x128xf32, #tpu.memory_space<vmem>>) attributes {dimension_semantics = [#tpu.dimension_semantics<parallel>], iteration_bounds = array<i64: 2>, scalar_prefetch = 0 : i64, scratch_operands = 0 : i64, tpu.core_type = #tpu.core_type<tc>, window_params = [{transform_indices = @transform_0, window_bounds = array<i64: 1, 4, 256>}, {pipeline_mode = #tpu.pipeline_mode<synchronous>, transform_indices = @transform_1, window_bounds = array<i64: 32, 4>}, {pipeline_mode = #tpu.pipeline_mode<synchronous>, transform_indices = @transform_2, window_bounds = array<i64: 32, 1>}, {pipeline_mode = #tpu.pipeline_mode<synchronous>, transform_indices = @transform_3, window_bounds = array<i64: 12, 32>}, {pipeline_mode = #tpu.pipeline_mode<synchronous>, transform_indices = @transform_4, window_bounds = array<i64: 12, 1>}, {pipeline_mode = #tpu.pipeline_mode<synchronous>, transform_indices = @transform_5, window_bounds = array<i64: 9, 256>}, {transform_indices = @transform_6, window_bounds = array<i64: 1, 4, 5>}, {transform_indices = @transform_7, window_bounds = array<i64: 1, 1, 128>}, {transform_indices = @transform_8, window_bounds = array<i64: 1, 1, 128>}]} {
    %c0 = arith.constant 0 : index
    %c0_0 = arith.constant 0 : index
    %c0_1 = arith.constant 0 : index
    %0 = vector.load %arg1[%c0, %c0_0, %c0_1] : memref<1x4x256xf32, #tpu.memory_space<vmem>>, vector<1x4x256xf32>
    %1 = vector.shape_cast %0 : vector<1x4x256xf32> to vector<4x256xf32>
    %c0_2 = arith.constant 0 : index
    %c0_3 = arith.constant 0 : index
    %2 = vector.load %arg2[%c0_2, %c0_3] : memref<32x4xf32, #tpu.memory_space<vmem>>, vector<32x4xf32>
    %cst = arith.constant dense<0.000000e+00> : vector<32x256xf32>
    %3 = tpu.matmul %2, %1, %cst {dimension_numbers = #tpu.dot_dimension_numbers<[1], [0], [0], [1], [0, 0, 1, 1], [], []>} : vector<32x4xf32>, vector<4x256xf32>, vector<32x256xf32> -> vector<32x256xf32>
    %c0_4 = arith.constant 0 : index
    %c0_5 = arith.constant 0 : index
    %4 = vector.load %arg3[%c0_4, %c0_5] : memref<32x1xf32, #tpu.memory_space<vmem>>, vector<32x1xf32>
    %5 = vector.broadcast %4 : vector<32x1xf32> to vector<32x256xf32>
    %6 = arith.addf %3, %5 : vector<32x256xf32>
    %cst_6 = arith.constant 0.000000e+00 : f32
    %7 = vector.broadcast %cst_6 : f32 to vector<32x256xf32>
    %8 = arith.maximumf %6, %7 : vector<32x256xf32>
    %c0_7 = arith.constant 0 : index
    %c0_8 = arith.constant 0 : index
    %9 = vector.load %arg4[%c0_7, %c0_8] : memref<12x32xf32, #tpu.memory_space<vmem>>, vector<12x32xf32>
    %cst_9 = arith.constant dense<0.000000e+00> : vector<12x256xf32>
    %10 = tpu.matmul %9, %8, %cst_9 {dimension_numbers = #tpu.dot_dimension_numbers<[1], [0], [0], [1], [0, 0, 1, 1], [], []>} : vector<12x32xf32>, vector<32x256xf32>, vector<12x256xf32> -> vector<12x256xf32>
    %c0_10 = arith.constant 0 : index
    %c0_11 = arith.constant 0 : index
    %11 = vector.load %arg5[%c0_10, %c0_11] : memref<12x1xf32, #tpu.memory_space<vmem>>, vector<12x1xf32>
    %12 = vector.broadcast %11 : vector<12x1xf32> to vector<12x256xf32>
    %13 = arith.addf %10, %12 : vector<12x256xf32>
    %14 = vector.extract_strided_slice %13 {offsets = [0, 0], sizes = [8, 256], strides = [1, 1]} : vector<12x256xf32> to vector<8x256xf32>
    %15 = vector.extract_strided_slice %13 {offsets = [8, 0], sizes = [4, 256], strides = [1, 1]} : vector<12x256xf32> to vector<4x256xf32>
    %16 = arith.negf %14 : vector<8x256xf32>
    %17 = math.exp %16 : vector<8x256xf32>
    %cst_12 = arith.constant 1.000000e+00 : f32
    %18 = vector.broadcast %cst_12 : f32 to vector<8x256xf32>
    %19 = arith.addf %18, %17 : vector<8x256xf32>
    %20 = arith.divf %18, %19 : vector<8x256xf32>
    %cst_13 = arith.constant 9.99999974E-5 : f32
    %cst_14 = arith.constant 0.999899983 : f32
    %21 = vector.broadcast %cst_13 : f32 to vector<8x256xf32>
    %22 = arith.maximumf %21, %20 : vector<8x256xf32>
    %23 = vector.broadcast %cst_14 : f32 to vector<8x256xf32>
    %24 = arith.minimumf %23, %22 : vector<8x256xf32>
    %c0_15 = arith.constant 0 : index
    %c0_16 = arith.constant 0 : index
    %25 = vector.load %arg6[%c0_15, %c0_16] : memref<9x256xf32, #tpu.memory_space<vmem>>, vector<9x256xf32>
    %26 = vector.extract_strided_slice %25 {offsets = [0, 0], sizes = [1, 256], strides = [1, 1]} : vector<9x256xf32> to vector<1x256xf32>
    %27 = vector.extract_strided_slice %25 {offsets = [1, 0], sizes = [1, 256], strides = [1, 1]} : vector<9x256xf32> to vector<1x256xf32>
    %28 = vector.extract_strided_slice %25 {offsets = [2, 0], sizes = [1, 256], strides = [1, 1]} : vector<9x256xf32> to vector<1x256xf32>
    %29 = vector.extract_strided_slice %25 {offsets = [3, 0], sizes = [1, 256], strides = [1, 1]} : vector<9x256xf32> to vector<1x256xf32>
    %30 = vector.extract_strided_slice %25 {offsets = [4, 0], sizes = [1, 256], strides = [1, 1]} : vector<9x256xf32> to vector<1x256xf32>
    %31 = vector.extract_strided_slice %25 {offsets = [5, 0], sizes = [1, 256], strides = [1, 1]} : vector<9x256xf32> to vector<1x256xf32>
    %32 = vector.extract_strided_slice %25 {offsets = [6, 0], sizes = [1, 256], strides = [1, 1]} : vector<9x256xf32> to vector<1x256xf32>
    %33 = vector.extract_strided_slice %25 {offsets = [7, 0], sizes = [1, 256], strides = [1, 1]} : vector<9x256xf32> to vector<1x256xf32>
    %34 = vector.extract_strided_slice %25 {offsets = [8, 0], sizes = [1, 256], strides = [1, 1]} : vector<9x256xf32> to vector<1x256xf32>
    %c0_17 = arith.constant 0 : index
    %c0_18 = arith.constant 0 : index
    %c0_19 = arith.constant 0 : index
    %35 = vector.load %arg7[%c0_17, %c0_18, %c0_19] : memref<1x4x5xf32, #tpu.memory_space<vmem>>, vector<1x4x5xf32>
    %36 = vector.shape_cast %35 : vector<1x4x5xf32> to vector<4x5xf32>
    %37 = vector.extract_strided_slice %36 {offsets = [0, 0], sizes = [4, 1], strides = [1, 1]} : vector<4x5xf32> to vector<4x1xf32>
    %38 = vector.extract_strided_slice %36 {offsets = [0, 1], sizes = [4, 1], strides = [1, 1]} : vector<4x5xf32> to vector<4x1xf32>
    %39 = vector.extract_strided_slice %36 {offsets = [0, 2], sizes = [4, 1], strides = [1, 1]} : vector<4x5xf32> to vector<4x1xf32>
    %40 = vector.extract_strided_slice %36 {offsets = [0, 3], sizes = [4, 1], strides = [1, 1]} : vector<4x5xf32> to vector<4x1xf32>
    %41 = vector.extract_strided_slice %36 {offsets = [0, 4], sizes = [4, 1], strides = [1, 1]} : vector<4x5xf32> to vector<4x1xf32>
    %cst_20 = arith.constant -1.000000e+00 : f32
    %42 = vector.broadcast %cst_20 : f32 to vector<4x1xf32>
    %43 = arith.cmpf one, %41, %42 : vector<4x1xf32>
    %44 = arith.subf %39, %37 : vector<4x1xf32>
    %45 = arith.subf %40, %38 : vector<4x1xf32>
    %46 = arith.mulf %44, %45 : vector<4x1xf32>
    %47 = vector.broadcast %28 : vector<1x256xf32> to vector<4x256xf32>
    %48 = vector.broadcast %39 : vector<4x1xf32> to vector<4x256xf32>
    %49 = arith.minimumf %47, %48 : vector<4x256xf32>
    %50 = vector.broadcast %26 : vector<1x256xf32> to vector<4x256xf32>
    %51 = vector.broadcast %37 : vector<4x1xf32> to vector<4x256xf32>
    %52 = arith.maximumf %50, %51 : vector<4x256xf32>
    %53 = arith.subf %49, %52 : vector<4x256xf32>
    %cst_21 = arith.constant 0.000000e+00 : f32
    %54 = vector.broadcast %cst_21 : f32 to vector<4x256xf32>
    %55 = arith.maximumf %53, %54 : vector<4x256xf32>
    %56 = vector.broadcast %29 : vector<1x256xf32> to vector<4x256xf32>
    %57 = vector.broadcast %40 : vector<4x1xf32> to vector<4x256xf32>
    %58 = arith.minimumf %56, %57 : vector<4x256xf32>
    %59 = vector.broadcast %27 : vector<1x256xf32> to vector<4x256xf32>
    %60 = vector.broadcast %38 : vector<4x1xf32> to vector<4x256xf32>
    %61 = arith.maximumf %59, %60 : vector<4x256xf32>
    %62 = arith.subf %58, %61 : vector<4x256xf32>
    %cst_22 = arith.constant 0.000000e+00 : f32
    %63 = vector.broadcast %cst_22 : f32 to vector<4x256xf32>
    %64 = arith.maximumf %62, %63 : vector<4x256xf32>
    %65 = arith.mulf %55, %64 : vector<4x256xf32>
    %66 = vector.broadcast %34 : vector<1x256xf32> to vector<4x256xf32>
    %67 = vector.broadcast %46 : vector<4x1xf32> to vector<4x256xf32>
    %68 = arith.addf %66, %67 : vector<4x256xf32>
    %69 = arith.subf %68, %65 : vector<4x256xf32>
    %cst_23 = arith.constant 9.99999993E-9 : f32
    %70 = vector.broadcast %cst_23 : f32 to vector<4x256xf32>
    %71 = arith.maximumf %69, %70 : vector<4x256xf32>
    %72 = arith.divf %65, %71 : vector<4x256xf32>
    %cst_24 = arith.constant -1.000000e+00 : f32
    %73 = vector.shape_cast %43 : vector<4x1xi1> to vector<4x1xi1>
    %74 = vector.broadcast %73 : vector<4x1xi1> to vector<4x256xi1>
    %75 = vector.broadcast %cst_24 : f32 to vector<4x256xf32>
    %76 = arith.select %74, %72, %75 : vector<4x256xi1>, vector<4x256xf32>
    %cst_25 = arith.constant dense<0xFF800000> : vector<256xf32>
    %77 = vector.multi_reduction <maximumf>, %76, %cst_25 [0] : vector<4x256xf32> to vector<256xf32>
    %78 = vector.shape_cast %77 : vector<256xf32> to vector<1x256xf32>
    %79 = tpu.iota {dimensions = array<i32: 0>} : vector<4x256xi32>
    %80 = vector.broadcast %78 : vector<1x256xf32> to vector<4x256xf32>
    %81 = arith.cmpf oeq, %76, %80 : vector<4x256xf32>
    %c4_i32 = arith.constant 4 : i32
    %82 = vector.broadcast %c4_i32 : i32 to vector<4x256xi32>
    %83 = arith.select %81, %79, %82 : vector<4x256xi1>, vector<4x256xi32>
    %cst_26 = arith.constant dense<2147483647> : vector<256xi32>
    %84 = vector.multi_reduction <minsi>, %83, %cst_26 [0] : vector<4x256xi32> to vector<256xi32>
    %85 = vector.shape_cast %84 : vector<256xi32> to vector<1x256xi32>
    %86 = vector.broadcast %85 : vector<1x256xi32> to vector<4x256xi32>
    %87 = arith.cmpi eq, %79, %86 : vector<4x256xi32>
    %88 = arith.extui %87 : vector<4x256xi1> to vector<4x256xi32>
    %89 = arith.sitofp %88 : vector<4x256xi32> to vector<4x256xf32>
    %90 = vector.broadcast %37 : vector<4x1xf32> to vector<4x256xf32>
    %91 = arith.mulf %89, %90 : vector<4x256xf32>
    %cst_27 = arith.constant dense<0.000000e+00> : vector<256xf32>
    %92 = vector.multi_reduction <add>, %91, %cst_27 [0] : vector<4x256xf32> to vector<256xf32>
    %93 = vector.shape_cast %92 : vector<256xf32> to vector<1x256xf32>
    %94 = vector.broadcast %38 : vector<4x1xf32> to vector<4x256xf32>
    %95 = arith.mulf %89, %94 : vector<4x256xf32>
    %cst_28 = arith.constant dense<0.000000e+00> : vector<256xf32>
    %96 = vector.multi_reduction <add>, %95, %cst_28 [0] : vector<4x256xf32> to vector<256xf32>
    %97 = vector.shape_cast %96 : vector<256xf32> to vector<1x256xf32>
    %98 = vector.broadcast %39 : vector<4x1xf32> to vector<4x256xf32>
    %99 = arith.mulf %89, %98 : vector<4x256xf32>
    %cst_29 = arith.constant dense<0.000000e+00> : vector<256xf32>
    %100 = vector.multi_reduction <add>, %99, %cst_29 [0] : vector<4x256xf32> to vector<256xf32>
    %101 = vector.shape_cast %100 : vector<256xf32> to vector<1x256xf32>
    %102 = vector.broadcast %40 : vector<4x1xf32> to vector<4x256xf32>
    %103 = arith.mulf %89, %102 : vector<4x256xf32>
    %cst_30 = arith.constant dense<0.000000e+00> : vector<256xf32>
    %104 = vector.multi_reduction <add>, %103, %cst_30 [0] : vector<4x256xf32> to vector<256xf32>
    %105 = vector.shape_cast %104 : vector<256xf32> to vector<1x256xf32>
    %106 = vector.broadcast %41 : vector<4x1xf32> to vector<4x256xf32>
    %107 = arith.mulf %89, %106 : vector<4x256xf32>
    %cst_31 = arith.constant dense<0.000000e+00> : vector<256xf32>
    %108 = vector.multi_reduction <add>, %107, %cst_31 [0] : vector<4x256xf32> to vector<256xf32>
    %109 = vector.shape_cast %108 : vector<256xf32> to vector<1x256xf32>
    %cst_32 = arith.constant 5.000000e-01 : f32
    %110 = vector.broadcast %cst_32 : f32 to vector<1x256xf32>
    %111 = arith.cmpf oge, %78, %110 : vector<1x256xf32>
    %cst_33 = arith.constant 4.000000e-01 : f32
    %112 = vector.broadcast %cst_33 : f32 to vector<1x256xf32>
    %113 = arith.cmpf olt, %78, %112 : vector<1x256xf32>
    %114 = arith.extui %111 : vector<1x256xi1> to vector<1x256xi32>
    %115 = arith.sitofp %114 : vector<1x256xi32> to vector<1x256xf32>
    %116 = vector.shape_cast %115 : vector<1x256xf32> to vector<1x1x256xf32>
    %cst_34 = arith.constant dense<0.000000e+00> : vector<1xf32>
    %117 = vector.multi_reduction <add>, %116, %cst_34 [1, 2] : vector<1x1x256xf32> to vector<1xf32>
    %118 = vector.shape_cast %117 : vector<1xf32> to vector<1x1x1xf32>
    %119 = vector.extract %118[0, 0, 0] : f32 from vector<1x1x1xf32>
    %120 = tpu.iota {dimensions = array<i32: 0>} : vector<8x256xi32>
    %121 = arith.fptosi %109 : vector<1x256xf32> to vector<1x256xi32>
    %122 = vector.broadcast %121 : vector<1x256xi32> to vector<8x256xi32>
    %123 = arith.cmpi eq, %120, %122 : vector<8x256xi32>
    %cst_35 = arith.constant 1.000000e+00 : f32
    %cst_36 = arith.constant 0.000000e+00 : f32
    %124 = vector.broadcast %cst_35 : f32 to vector<8x256xf32>
    %125 = vector.broadcast %cst_36 : f32 to vector<8x256xf32>
    %126 = arith.select %123, %124, %125 : vector<8x256xi1>, vector<8x256xf32>
    %cst_37 = arith.constant 0.000000e+00 : f32
    %cst_38 = arith.constant -1.000000e+00 : f32
    %127 = vector.broadcast %cst_37 : f32 to vector<1x256xf32>
    %128 = vector.broadcast %cst_38 : f32 to vector<1x256xf32>
    %129 = arith.select %113, %127, %128 : vector<1x256xi1>, vector<1x256xf32>
    %130 = vector.shape_cast %111 : vector<1x256xi1> to vector<1x256xi1>
    %131 = vector.broadcast %130 : vector<1x256xi1> to vector<8x256xi1>
    %132 = vector.shape_cast %129 : vector<1x256xf32> to vector<1x256xf32>
    %133 = vector.broadcast %132 : vector<1x256xf32> to vector<8x256xf32>
    %134 = arith.select %131, %126, %133 : vector<8x256xi1>, vector<8x256xf32>
    %cst_39 = arith.constant 1.000000e+00 : f32
    %135 = vector.broadcast %cst_39 : f32 to vector<8x256xf32>
    %136 = arith.cmpf oeq, %134, %135 : vector<8x256xf32>
    %cst_40 = arith.constant 2.500000e-01 : f32
    %cst_41 = arith.constant 7.500000e-01 : f32
    %137 = vector.broadcast %cst_40 : f32 to vector<8x256xf32>
    %138 = vector.broadcast %cst_41 : f32 to vector<8x256xf32>
    %139 = arith.select %136, %137, %138 : vector<8x256xi1>, vector<8x256xf32>
    %cst_42 = arith.constant 1.000000e+00 : f32
    %140 = vector.broadcast %cst_42 : f32 to vector<8x256xf32>
    %141 = arith.cmpf oeq, %134, %140 : vector<8x256xf32>
    %cst_43 = arith.constant 1.000000e+00 : f32
    %142 = vector.broadcast %cst_43 : f32 to vector<8x256xf32>
    %143 = arith.subf %142, %24 : vector<8x256xf32>
    %144 = arith.select %141, %143, %24 : vector<8x256xi1>, vector<8x256xf32>
    %145 = arith.mulf %139, %144 : vector<8x256xf32>
    %146 = arith.mulf %145, %144 : vector<8x256xf32>
    %147 = math.log %24 : vector<8x256xf32>
    %148 = arith.mulf %134, %147 : vector<8x256xf32>
    %cst_44 = arith.constant 1.000000e+00 : f32
    %149 = vector.broadcast %cst_44 : f32 to vector<8x256xf32>
    %150 = arith.subf %149, %134 : vector<8x256xf32>
    %cst_45 = arith.constant 1.000000e+00 : f32
    %151 = vector.broadcast %cst_45 : f32 to vector<8x256xf32>
    %152 = arith.subf %151, %24 : vector<8x256xf32>
    %153 = math.log %152 : vector<8x256xf32>
    %154 = arith.mulf %150, %153 : vector<8x256xf32>
    %155 = arith.addf %148, %154 : vector<8x256xf32>
    %cst_46 = arith.constant 0.000000e+00 : f32
    %156 = vector.broadcast %cst_46 : f32 to vector<8x256xf32>
    %157 = arith.subf %156, %155 : vector<8x256xf32>
    %cst_47 = arith.constant -1.000000e+00 : f32
    %158 = vector.broadcast %cst_47 : f32 to vector<8x256xf32>
    %159 = arith.cmpf one, %134, %158 : vector<8x256xf32>
    %160 = arith.mulf %146, %157 : vector<8x256xf32>
    %cst_48 = arith.constant 0.000000e+00 : f32
    %161 = vector.broadcast %cst_48 : f32 to vector<8x256xf32>
    %162 = arith.select %159, %160, %161 : vector<8x256xi1>, vector<8x256xf32>
    %163 = vector.shape_cast %162 : vector<8x256xf32> to vector<1x8x256xf32>
    %cst_49 = arith.constant dense<0.000000e+00> : vector<1xf32>
    %164 = vector.multi_reduction <add>, %163, %cst_49 [1, 2] : vector<1x8x256xf32> to vector<1xf32>
    %165 = vector.shape_cast %164 : vector<1xf32> to vector<1x1x1xf32>
    %166 = vector.extract %165[0, 0, 0] : f32 from vector<1x1x1xf32>
    %cst_50 = arith.constant 1.000000e+00 : f32
    %167 = arith.maximumf %119, %cst_50 : f32
    %168 = arith.divf %166, %167 : f32
    %169 = arith.subf %101, %93 : vector<1x256xf32>
    %170 = arith.subf %105, %97 : vector<1x256xf32>
    %cst_51 = arith.constant 5.000000e-01 : f32
    %171 = vector.broadcast %cst_51 : f32 to vector<1x256xf32>
    %172 = arith.mulf %171, %169 : vector<1x256xf32>
    %173 = arith.addf %93, %172 : vector<1x256xf32>
    %cst_52 = arith.constant 5.000000e-01 : f32
    %174 = vector.broadcast %cst_52 : f32 to vector<1x256xf32>
    %175 = arith.mulf %174, %170 : vector<1x256xf32>
    %176 = arith.addf %97, %175 : vector<1x256xf32>
    %cst_53 = arith.constant 1.000000e+00 : f32
    %177 = vector.broadcast %cst_53 : f32 to vector<1x256xf32>
    %178 = arith.maximumf %169, %177 : vector<1x256xf32>
    %cst_54 = arith.constant 1.000000e+00 : f32
    %179 = vector.broadcast %cst_54 : f32 to vector<1x256xf32>
    %180 = arith.maximumf %170, %179 : vector<1x256xf32>
    %181 = arith.subf %176, %31 : vector<1x256xf32>
    %182 = arith.mulf %181, %33 : vector<1x256xf32>
    %183 = arith.subf %173, %30 : vector<1x256xf32>
    %184 = arith.mulf %183, %32 : vector<1x256xf32>
    %185 = arith.mulf %180, %33 : vector<1x256xf32>
    %186 = math.log %185 : vector<1x256xf32>
    %187 = arith.mulf %178, %32 : vector<1x256xf32>
    %188 = math.log %187 : vector<1x256xf32>
    %189 = vector.extract_strided_slice %15 {offsets = [0, 0], sizes = [1, 256], strides = [1, 1]} : vector<4x256xf32> to vector<1x256xf32>
    %190 = arith.subf %182, %189 : vector<1x256xf32>
    %191 = math.absf %190 : vector<1x256xf32>
    %cst_55 = arith.constant 0.111111112 : f32
    %192 = vector.broadcast %cst_55 : f32 to vector<1x256xf32>
    %193 = arith.cmpf ole, %191, %192 : vector<1x256xf32>
    %cst_56 = arith.constant 4.500000e+00 : f32
    %194 = vector.broadcast %cst_56 : f32 to vector<1x256xf32>
    %195 = arith.mulf %194, %191 : vector<1x256xf32>
    %196 = arith.mulf %195, %191 : vector<1x256xf32>
    %cst_57 = arith.constant 0.055555556 : f32
    %197 = vector.broadcast %cst_57 : f32 to vector<1x256xf32>
    %198 = arith.subf %191, %197 : vector<1x256xf32>
    %199 = arith.select %193, %196, %198 : vector<1x256xi1>, vector<1x256xf32>
    %200 = vector.extract_strided_slice %15 {offsets = [1, 0], sizes = [1, 256], strides = [1, 1]} : vector<4x256xf32> to vector<1x256xf32>
    %201 = arith.subf %184, %200 : vector<1x256xf32>
    %202 = math.absf %201 : vector<1x256xf32>
    %cst_58 = arith.constant 0.111111112 : f32
    %203 = vector.broadcast %cst_58 : f32 to vector<1x256xf32>
    %204 = arith.cmpf ole, %202, %203 : vector<1x256xf32>
    %cst_59 = arith.constant 4.500000e+00 : f32
    %205 = vector.broadcast %cst_59 : f32 to vector<1x256xf32>
    %206 = arith.mulf %205, %202 : vector<1x256xf32>
    %207 = arith.mulf %206, %202 : vector<1x256xf32>
    %cst_60 = arith.constant 0.055555556 : f32
    %208 = vector.broadcast %cst_60 : f32 to vector<1x256xf32>
    %209 = arith.subf %202, %208 : vector<1x256xf32>
    %210 = arith.select %204, %207, %209 : vector<1x256xi1>, vector<1x256xf32>
    %211 = arith.addf %199, %210 : vector<1x256xf32>
    %212 = vector.extract_strided_slice %15 {offsets = [2, 0], sizes = [1, 256], strides = [1, 1]} : vector<4x256xf32> to vector<1x256xf32>
    %213 = arith.subf %186, %212 : vector<1x256xf32>
    %214 = math.absf %213 : vector<1x256xf32>
    %cst_61 = arith.constant 0.111111112 : f32
    %215 = vector.broadcast %cst_61 : f32 to vector<1x256xf32>
    %216 = arith.cmpf ole, %214, %215 : vector<1x256xf32>
    %cst_62 = arith.constant 4.500000e+00 : f32
    %217 = vector.broadcast %cst_62 : f32 to vector<1x256xf32>
    %218 = arith.mulf %217, %214 : vector<1x256xf32>
    %219 = arith.mulf %218, %214 : vector<1x256xf32>
    %cst_63 = arith.constant 0.055555556 : f32
    %220 = vector.broadcast %cst_63 : f32 to vector<1x256xf32>
    %221 = arith.subf %214, %220 : vector<1x256xf32>
    %222 = arith.select %216, %219, %221 : vector<1x256xi1>, vector<1x256xf32>
    %223 = arith.addf %211, %222 : vector<1x256xf32>
    %224 = vector.extract_strided_slice %15 {offsets = [3, 0], sizes = [1, 256], strides = [1, 1]} : vector<4x256xf32> to vector<1x256xf32>
    %225 = arith.subf %188, %224 : vector<1x256xf32>
    %226 = math.absf %225 : vector<1x256xf32>
    %cst_64 = arith.constant 0.111111112 : f32
    %227 = vector.broadcast %cst_64 : f32 to vector<1x256xf32>
    %228 = arith.cmpf ole, %226, %227 : vector<1x256xf32>
    %cst_65 = arith.constant 4.500000e+00 : f32
    %229 = vector.broadcast %cst_65 : f32 to vector<1x256xf32>
    %230 = arith.mulf %229, %226 : vector<1x256xf32>
    %231 = arith.mulf %230, %226 : vector<1x256xf32>
    %cst_66 = arith.constant 0.055555556 : f32
    %232 = vector.broadcast %cst_66 : f32 to vector<1x256xf32>
    %233 = arith.subf %226, %232 : vector<1x256xf32>
    %234 = arith.select %228, %231, %233 : vector<1x256xi1>, vector<1x256xf32>
    %235 = arith.addf %223, %234 : vector<1x256xf32>
    %cst_67 = arith.constant 0.000000e+00 : f32
    %236 = vector.broadcast %cst_67 : f32 to vector<1x256xf32>
    %237 = arith.select %111, %235, %236 : vector<1x256xi1>, vector<1x256xf32>
    %238 = vector.shape_cast %237 : vector<1x256xf32> to vector<1x1x256xf32>
    %cst_68 = arith.constant dense<0.000000e+00> : vector<1xf32>
    %239 = vector.multi_reduction <add>, %238, %cst_68 [1, 2] : vector<1x1x256xf32> to vector<1xf32>
    %240 = vector.shape_cast %239 : vector<1xf32> to vector<1x1x1xf32>
    %241 = vector.extract %240[0, 0, 0] : f32 from vector<1x1x1xf32>
    %cst_69 = arith.constant 0.000000e+00 : f32
    %242 = arith.cmpf ogt, %119, %cst_69 : f32
    %cst_70 = arith.constant 4.000000e+00 : f32
    %243 = arith.mulf %cst_70, %119 : f32
    %cst_71 = arith.constant 1.000000e+00 : f32
    %244 = arith.maximumf %243, %cst_71 : f32
    %245 = arith.divf %241, %244 : f32
    %cst_72 = arith.constant 0.000000e+00 : f32
    %246 = arith.select %242, %245, %cst_72 : f32
    %247 = vector.broadcast %168 : f32 to vector<1x1x128xf32>
    %c0_73 = arith.constant 0 : index
    %c0_74 = arith.constant 0 : index
    %c0_75 = arith.constant 0 : index
    %248 = vector.load %arg8[%c0_73, %c0_74, %c0_75] : memref<1x1x128xf32, #tpu.memory_space<vmem>>, vector<1x1x128xf32>
    tpu.vector_store %arg8[%c0_73, %c0_74, %c0_75], %247 {strides = array<i32>} : memref<1x1x128xf32, #tpu.memory_space<vmem>>, vector<1x1x128xf32>,
    %249 = vector.broadcast %246 : f32 to vector<1x1x128xf32>
    %c0_76 = arith.constant 0 : index
    %c0_77 = arith.constant 0 : index
    %c0_78 = arith.constant 0 : index
    %250 = vector.load %arg9[%c0_76, %c0_77, %c0_78] : memref<1x1x128xf32, #tpu.memory_space<vmem>>, vector<1x1x128xf32>
    tpu.vector_store %arg9[%c0_76, %c0_77, %c0_78], %249 {strides = array<i32>} : memref<1x1x128xf32, #tpu.memory_space<vmem>>, vector<1x1x128xf32>,
    return
  }
  func.func @transform_0(%arg0: i32) -> (i32, i32, i32) {
    %c0_i32 = arith.constant 0 : i32
    %c0_i32_0 = arith.constant 0 : i32
    %c0_i32_1 = arith.constant 0 : i32
    return %arg0, %c0_i32, %c0_i32_0 : i32, i32, i32
  }
  func.func @transform_1(%arg0: i32) -> (i32, i32) {
    %c0_i32 = arith.constant 0 : i32
    %c0_i32_0 = arith.constant 0 : i32
    %c0_i32_1 = arith.constant 0 : i32
    return %c0_i32, %c0_i32_0 : i32, i32
  }
  func.func @transform_2(%arg0: i32) -> (i32, i32) {
    %c0_i32 = arith.constant 0 : i32
    %c0_i32_0 = arith.constant 0 : i32
    %c0_i32_1 = arith.constant 0 : i32
    return %c0_i32, %c0_i32_0 : i32, i32
  }
  func.func @transform_3(%arg0: i32) -> (i32, i32) {
    %c0_i32 = arith.constant 0 : i32
    %c0_i32_0 = arith.constant 0 : i32
    %c0_i32_1 = arith.constant 0 : i32
    return %c0_i32, %c0_i32_0 : i32, i32
  }
  func.func @transform_4(%arg0: i32) -> (i32, i32) {
    %c0_i32 = arith.constant 0 : i32
    %c0_i32_0 = arith.constant 0 : i32
    %c0_i32_1 = arith.constant 0 : i32
    return %c0_i32, %c0_i32_0 : i32, i32
  }
  func.func @transform_5(%arg0: i32) -> (i32, i32) {
    %c0_i32 = arith.constant 0 : i32
    %c0_i32_0 = arith.constant 0 : i32
    %c0_i32_1 = arith.constant 0 : i32
    return %c0_i32, %c0_i32_0 : i32, i32
  }
  func.func @transform_6(%arg0: i32) -> (i32, i32, i32) {
    %c0_i32 = arith.constant 0 : i32
    %c0_i32_0 = arith.constant 0 : i32
    %c0_i32_1 = arith.constant 0 : i32
    return %arg0, %c0_i32, %c0_i32_0 : i32, i32, i32
  }
  func.func @transform_7(%arg0: i32) -> (i32, i32, i32) {
    %c0_i32 = arith.constant 0 : i32
    %c0_i32_0 = arith.constant 0 : i32
    %c0_i32_1 = arith.constant 0 : i32
    return %arg0, %c0_i32, %c0_i32_0 : i32, i32, i32
  }
  func.func @transform_8(%arg0: i32) -> (i32, i32, i32) {
    %c0_i32 = arith.constant 0 : i32
    %c0_i32_0 = arith.constant 0 : i32
    %c0_i32_1 = arith.constant 0 : i32
    return %arg0, %c0_i32, %c0_i32_0 : i32, i32, i32
  }
}

</mosaic_0001>

<bundles_post_ra>
// kernel: model_with_loss.1
= control target key start
LH: loop header
LB: loop body
LE: loop exit
PB: predicated region body
PF: predicated region fallthrough
CT: control target
= control target key end

     0   :  { %s1337_s27 = smov 0   ;;  %s1576_s0 = inlined_call_operand.vmem [shape: f32[2,4,256], index: 0, kind: input, shape index: {}]   ;;  %s1577_s1 = inlined_call_operand.vmem [shape: f32[32,4], index: 1, kind: input, shape index: {}]   ;;  %s1578_s2 = inlined_call_operand.vmem [shape: f32[32,1], index: 2, kind: input, shape index: {}]   ;;  %s1579_s3 = inlined_call_operand.vmem [shape: f32[12,32], index: 3, kind: input, shape index: {}]   ;;  %s1580_s4 = inlined_call_operand.vmem [shape: f32[12,1], index: 4, kind: input, shape index: {}]   ;;  %s1581_s5 = inlined_call_operand.vmem [shape: f32[9,256], index: 5, kind: input, shape index: {}]   ;;  %s1582_s6 = inlined_call_operand.vmem [shape: f32[2,4,5], index: 6, kind: input, shape index: {}]   ;;  %s1583_s7 = inlined_call_operand.vmem [shape: f32[2,1,128], index: 7, kind: output, shape index: {0}]   ;;  %s1584_s8 = inlined_call_operand.vmem [shape: f32[2,1,128], index: 8, kind: output, shape index: {1}]  }
   0x1 LB: > { %s1162_s28 = sadd.s32 4294967295, %s1279_s27   ;;  %p1166_p0 = scmp.ge.s32.totalorder %s1279_s27, 1  ;;  %s1279_s27 = sphi %s1337_s27, %s19_s27  }
   0x2   : > { %p274_p1 = scmp.lt.s32.totalorder %s1279_s27, 3 }
   0x4   : > { %p275_p2 = pnand %p1166_p0, %p274_p1 }
   0x5   : > { %p313_p3 = scmp.lt.s32.totalorder (!%p275_p2), %s1162_s28, 1  ;;  %s1283_s25 = smov (!%p275_p2), 2  }
   0x6   : > { %278 = sbr.rel (%p275_p2) target bundleno = 720 (0x2d0), region = 48  ;;  %s1286_s12 = smov (!%p275_p2), 127  }
   0x7   : > { %s1291_s11 = smov (!%p275_p2), 1.0  }
   0xb   : > { %v336_v0 = vld [vmem:[%s1578_s2 + $0x18] sm:$0xff]  ;;  %v1281_v1 = vmov 0   ;;  %v1282_v2 = vmov 0.0   ;;  %s1586_s28 = smov (!%p313_p3, %s1162_s28), 1  ;;  %v334_v3 = vld [vmem:[%s1578_s2 + $0x8] sm:$0xff]  ;;  %v335_v4 = vld [vmem:[%s1578_s2 + $0x10] sm:$0xff]  ;;  %v604_v54 = vlaneseq }
   0xc   : > { %1230 = vset.pattern.permute.xlu0 %v1281_v1  ;;  %441 = vmatprep.mubr.f32.mxu0 %v1282_v2  ;;  %s1196_s13 = sshll.u32 %s1586_s28, 3  ;;  %s1169_s14 = sshll.u32 %s1586_s28, 2  ;;  %v333_v5 = vld [vmem:[%s1578_s2] sm:$0xff]  ;;  %vm372_vm0 = vcmask 1043456   ;;  %vm359_vm1 = vcmask 31744   ;;  %v1284_v10 = vmov 2  }
   0xd   : > { %354 = vperm.xlu0 %1230, %v336_v0   ;;  %1231 = vset.pattern.permute.xlu1 %v1281_v1  ;;  %s317_s19 = scalar_lea.vmem %s1576_s0, %s1196_s13  ;;  %s321_s22 = scalar_lea.vmem %s1582_s6, %s1169_s14  ;;  %v329_v9 = vld [vmem:[%s1577_s1] sm:$0xff]  ;;  %v330_v11 = vld [vmem:[%s1577_s1 + $0x8] sm:$0xff]  ;;  %v331_v12 = vld [vmem:[%s1577_s1 + $0x10] sm:$0xff]  ;;  %v1285_v13 = vmov 1   ;;  %v1287_v20 = vmov 3   ;;  %v1288_v21 = vmov 4  }
   0xe   : > { %344 = vperm.xlu1 %1231, %v334_v3   ;;  %559 = vmatprep.mubr.f32.mxu1 %v1282_v2  ;;  %v328_v6 = vld [vmem:[%s317_s19] sm:$0xff]  ;;  %v332_v14 = vld [vmem:[%s1577_s1 + $0x18] sm:$0xff]  ;;  %vm488_vm2 = vcmask 261120   ;;  %v475_v49 = vld [vmem:[%s1579_s3 + $0x8] sm:$0xf]  ;;  %v1418_v55 = vshrl.u32 %v604_v54, 7  ;;  %s324_s17 = scalar_lea.vmem %s1583_s7, %s1586_s28 }
   0xf   : > { %v358_v7 = vcombine.high %v328_v6, %v328_v6  ;;  %v1371_v8 = vld [vmem:[%s321_s22] sm:$0xf]  ;;  %v477_v53 = vld [vmem:[%s1580_s4 + $0x8] sm:$0xf]  ;;  %vm838_vm5 = vcmask 1040384  }
  0x10   : > { %v476_v19 = vld [vmem:[%s1580_s4] sm:$0xff]  ;;  %vm593_vm3 = vcmp.ne.f32.partialorder %v1371_v8, -1.0  ;;  %v638_v58 = vsub.s32 3, %v1418_v55  ;;  %v652_v59 = vsub.s32 1, %v1418_v55  ;;  %v620_v60 = vsub.s32 0, %v1418_v55  ;;  %v1436_v63 = vld [vmem:[%s1581_s5 + $0x8] sm:$0xff] }
  0x11   : > { %349 = vperm.xlu0 %1230, %v335_v4   ;;  %1170 = vmatprep.subr.msk.mxu0 %vm372_vm0, %v358_v7  ;;  %v474_v48 = vld [vmem:[%s1579_s3] sm:$0xff]  ;;  %v693_v52 = vsel %vm593_vm3, 1, %v1281_v1  ;;  %v606_v61 = vsub.s32 2, %v1418_v55 }
  0x12   : > { %339 = vperm.xlu1 %1231, %v333_v5   ;;  %1171 = vmatpush1.msk.msra.mxu0 %vm372_vm0, %v328_v6  ;;  %v1431_v62 = vld [vmem:[%s1581_s5] sm:$0xff]  ;;  %v657_v4 = vrot.slane %v1436_v63, %v652_v59 }
  0x13   : > { %1172 = vmatmul.mubr.msk.f32.vlgmr.msra.gmra.mxu0 %vm359_vm1, %v329_v9  ;;  %v639_v0 = vrot.slane %v1431_v62, %v638_v58  ;;  %v653_v3 = vrot.slane %v1431_v62, %v652_v59  ;;  %v621_v7 = vrot.slane %v1431_v62, %v620_v60  ;;  %v607_v9 = vrot.slane %v1431_v62, %v606_v61 }
  0x14   : > { %447 = vmatprep.mubr.f32.mxu0 %v1282_v2 }
  0x15   : > { %595 = vrot.lane.b32.xlu0 %v1371_v8, %s1283_s25  ;;  %s327_s25 = scalar_lea.vmem %s1584_s8, %s1586_s28 }
  0x16   : > { %1232 = vset.pattern.permute.xlu0 %v1284_v10 }
  0x17   : > { %1173 = vmatmul.mubr.msk.f32.gmra.mxu0 %vm359_vm1, %v330_v11 }
  0x18   : > { %453 = vmatprep.mubr.f32.mxu0 %v1282_v2 }
  0x19   : > { %613 = vperm.xlu0 %1232, %v1371_v8  }
  0x1b   : > { %1174 = vmatmul.mubr.msk.f32.gmra.mxu0 %vm359_vm1, %v331_v12 }
  0x1c   : > { %459 = vmatprep.mubr.f32.mxu0 %v1282_v2 }
  0x1d   : > { %1234 = vset.pattern.permute.xlu0 %v1285_v13 }
  0x1e   : > { %659 = vperm.xlu0 %1234, %v1371_v8  }
  0x1f   : > { %1175 = vmatmul.mubr.msk.f32.gmra.mxu0 %vm359_vm1, %v332_v14 }
  0x22   : > { %1237 = vset.pattern.permute.xlu0 %v1281_v1 }
  0x23   : > { %480 = vperm.xlu0 %1237, %v476_v19  }
  0x27   : > { %1239 = vset.pattern.permute.xlu0 %v1288_v21 }
  0x88   : > { %v355_v15 = vpop.permute.xlu0 %354 }
  0x89   : > { %v345_v28 = vpop.permute.xlu1 %344 }
  0x8c   : > { %v350_v16 = vpop.permute.xlu0 %349 }
  0x8d   : > { %v340_v35 = vpop.permute.xlu1 %339 }
  0x90   : > { %v596_v17 = vpop.permute.xlu0 %595 }
  0x91   : > { %v598_v18 = vsub.f32 %v1371_v8, %v596_v17 }
  0x93   : > { %600 = vrot.lane.b32.xlu1 %v598_v18, %s1286_s12 }
  0x94   : > { %v1422_v57 = vpop.permute.xlu0 %613 }
  0x95   : > { %v616_v17 = vmin.f32 %v607_v9, %v1422_v57 }
  0x97   : > { %627 = vperm.xlu1 %1231, %v1371_v8  }
  0x99   : > { %v1444_v6 = vpop.permute.xlu0 %659 }
  0x9a   : > { %v662_v13 = vmax.f32 %v653_v3, %v1444_v6  ;;  %v663_v14 = vmax.f32 %v657_v4, %v1444_v6 }
  0x9b   : > { %1233 = vset.pattern.permute.xlu1 %v1287_v20 }
  0x9c   : > { %645 = vperm.xlu1 %1233, %v1371_v8  }
  0xa0   : > { %1235 = vset.pattern.permute.xlu1 %v1284_v10  ;;  %v611_v10 = vrot.slane %v1436_v63, %v606_v61 }
  0xd3   : > { %v443_v22 = vpop.f32.mrf.mxu0 }
  0xd4   : > { %v444_v42 = vadd.f32 %v443_v22, %v340_v35 }
  0xd5   : > { %v445_v23 = vpop.f32.mrf.mxu0 }
  0xd6   : > { %v446_v40 = vadd.f32 %v445_v23, %v340_v35  ;;  %v466_v47 = vmax.f32 %v444_v42, 0.0 }
  0xd7   : > { %v449_v24 = vpop.f32.mrf.mxu0 }
  0xd8   : > { %v450_v38 = vadd.f32 %v449_v24, %v345_v28  ;;  %v467_v46 = vmax.f32 %v446_v40, 0.0 }
  0xd9   : > { %v451_v25 = vpop.f32.mrf.mxu0 }
  0xda   : > { %v452_v36 = vadd.f32 %v451_v25, %v345_v28  ;;  %v468_v45 = vmax.f32 %v450_v38, 0.0  ;;  %v1180_v25 = vld [vmem:[%s1581_s5 + $0x10] ss:$0 sm:$0xff] }
  0xdb   : > { %v455_v26 = vpop.f32.mrf.mxu0 }
  0xdc   : > { %v456_v34 = vadd.f32 %v455_v26, %v350_v16  ;;  %v469_v44 = vmax.f32 %v452_v36, 0.0  ;;  %v1181_v26 = vld [vmem:[%s1581_s5 + $0x18] ss:$0 sm:$0xff] }
  0xdd   : > { %v457_v27 = vpop.f32.mrf.mxu0 }
  0xde   : > { %v458_v32 = vadd.f32 %v457_v27, %v350_v16  ;;  %v470_v43 = vmax.f32 %v456_v34, 0.0 }
  0xdf   : > { %v461_v29 = vpop.f32.mrf.mxu0 }
  0xe0   : > { %v462_v30 = vadd.f32 %v461_v29, %v355_v15  ;;  %v471_v41 = vmax.f32 %v458_v32, 0.0 }
  0xe1   : > { %v463_v31 = vpop.f32.mrf.mxu0 }
  0xe2   : > { %v464_v33 = vadd.f32 %v463_v31, %v355_v15  ;;  %v472_v39 = vmax.f32 %v462_v30, 0.0 }
  0xe4   : > { %v473_v37 = vmax.f32 %v464_v33, 0.0 }
  0xe6   : > { %519 = vmatprep.subr.mxu1 %v473_v37 }
  0xe7   : > { %520 = vmatpush1.msra.mxu1 %v472_v39 }
  0xe8   : > { %521 = vmatprep.subr.mxu1 %v471_v41 }
  0xe9   : > { %522 = vmatpush1.msra.mxu1 %v470_v43 }
  0xea   : > { %523 = vmatprep.subr.mxu1 %v469_v44 }
  0xeb   : > { %524 = vmatpush1.msra.mxu1 %v468_v45 }
  0xec   : > { %525 = vmatprep.subr.mxu1 %v467_v46 }
  0xed   : > { %526 = vmatpush1.msra.mxu1 %v466_v47 }
  0xee   : > { %1176 = vmatmul.mubr.msk.f32.vlgmr.msra.gmra.mxu1 %vm488_vm2, %v474_v48 }
  0xef   : > { %565 = vmatprep.mubr.f32.mxu1 %v1282_v2 }
  0xf2   : > { %1177 = vmatmul.mubr.msk.f32.gmra.mxu1 %vm488_vm2, %v475_v49 }
 0x105   : > { %v601_v50 = vpop.permute.xlu1 %600 }
 0x106   : > { %v603_v51 = vmul.f32 %v601_v50, %v598_v18  ;;  %v617_v18 = vmin.f32 %v611_v10, %v1422_v57 }
 0x108   : > { %680 = vperm.xlu1 %1235, %v603_v51  }
 0x10c   : > { %1236 = vset.pattern.permute.xlu1 %v1288_v21 }
 0x10d   : > { %695 = vperm.xlu1 %1236, %v693_v52  }
 0x111   : > { %811 = vperm.xlu1 %1236, %v1371_v8   ;;  %v625_v8 = vrot.slane %v1436_v63, %v620_v60 }
 0x112   : > { %v1420_v56 = vpop.permute.xlu1 %627 }
 0x113   : > { %v630_v15 = vmax.f32 %v621_v7, %v1420_v56  ;;  %v631_v16 = vmax.f32 %v625_v8, %v1420_v56 }
 0x115   : > { %1238 = vset.pattern.permute.xlu1 %v1281_v1  ;;  %v643_v1 = vrot.slane %v1436_v63, %v638_v58  ;;  %v632_v21 = vsub.f32 %v616_v17, %v630_v15  ;;  %v633_v22 = vsub.f32 %v617_v18, %v631_v16  ;;  %v481_v17 = vpop.permute.xlu0 %480 }
 0x116   : > { %485 = vperm.xlu1 %1238, %v477_v53  }
 0x117   : > { %v1442_v5 = vpop.permute.xlu1 %645  ;;  %v634_v27 = vmax.f32 %v632_v21, 0.0  ;;  %v635_v28 = vmax.f32 %v633_v22, 0.0 }
 0x118   : > { %v648_v11 = vmin.f32 %v639_v0, %v1442_v5  ;;  %v649_v12 = vmin.f32 %v643_v1, %v1442_v5 }
 0x11a   : > { %v664_v19 = vsub.f32 %v648_v11, %v662_v13  ;;  %v665_v20 = vsub.f32 %v649_v12, %v663_v14 }
 0x11c   : > { %v666_v23 = vmax.f32 %v664_v19, 0.0  ;;  %v667_v24 = vmax.f32 %v665_v20, 0.0 }
 0x11e   : > { %v668_v30 = vmul.f32 %v666_v23, %v634_v27  ;;  %v669_v31 = vmul.f32 %v667_v24, %v635_v28 }
 0x183   : > { %v681_v29 = vpop.permute.xlu1 %680 }
 0x184   : > { %v683_v32 = vadd.f32 %v1180_v25, %v681_v29  ;;  %v684_v33 = vadd.f32 %v1181_v26, %v681_v29 }
 0x186   : > { %v685_v34 = vsub.f32 %v683_v32, %v668_v30  ;;  %v686_v35 = vsub.f32 %v684_v33, %v669_v31 }
 0x188   : > { %v687_v36 = vmax.f32 %v685_v34, 1e-08  ;;  %v688_v37 = vmax.f32 %v686_v35, 1e-08  ;;  %v696_v38 = vpop.permute.xlu1 %695 }
 0x189   : > { %vm697_vm4 = vcmp.eq.s32.totalorder %v696_v38, 1 }
 0x18a   : > { %1241 = vrcp.f32 %v687_v36 }
 0x18b   : > { %1243 = vrcp.f32 %v688_v37 }
 0x197   : > { %v1242_v39 = vpop.eup %1241 }
 0x198   : > { %v1244_v40 = vpop.eup %1243  ;;  %v690_v41 = vmul.f32 %v1242_v39, %v668_v30 }
 0x199   : > { %v692_v42 = vmul.f32 %v1244_v40, %v669_v31 }
 0x19a   : > { %v698_v43 = vsel %vm697_vm4, %v690_v41, -1.0 }
 0x19b   : > { %v699_v44 = vsel %vm697_vm4, %v692_v42, -1.0  ;;  %v700_v45 = vsel %vm372_vm0, %v698_v43, -inf }
 0x19c   : > { %v701_v46 = vrot.slane %v700_v45, 4  ;;  %v707_v47 = vsel %vm372_vm0, %v699_v44, -inf }
 0x19d   : > { %v708_v48 = vrot.slane %v707_v47, 4 }
 0x19e   : > { %v702_v49 = vmax.f32 %v700_v45, %v701_v46 }
 0x19f   : > { %v709_v50 = vmax.f32 %v707_v47, %v708_v48 }
 0x1a0   : > { %v703_v51 = vrot.slane %v702_v49, 2 }
 0x1a1   : > { %v710_v52 = vrot.slane %v709_v50, 2 }
 0x1a2   : > { %v704_v53 = vmax.f32 %v702_v49, %v703_v51 }
 0x1a3   : > { %v711_v54 = vmax.f32 %v709_v50, %v710_v52 }
 0x1a4   : > { %v705_v58 = vrot.slane %v704_v53, 1 }
 0x1a5   : > { %v712_v59 = vrot.slane %v711_v54, 1 }
 0x1a6   : > { %v1466_v60 = vmax.f32 %v704_v53, %v705_v58 }
 0x1a7   : > { %v1468_v61 = vmax.f32 %v711_v54, %v712_v59  ;;  %v812_v54 = vpop.permute.xlu1 %811 }
 0x1a8   : > { %vm716_vm6 = vcmp.eq.f32.partialorder %v698_v43, %v1466_v60  ;;  %vm830_vm7 = vcmp.ge.f32.partialorder %v1466_v60, 0.5  ;;  %vm832_vm3 = vcmp.lt.f32.partialorder %v1466_v60, 0.4 }
 0x1a9   : > { %vm717_vm8 = vcmp.eq.f32.partialorder %v699_v44, %v1468_v61  ;;  %v718_v0 = vsel %vm716_vm6, %v1418_v55, 4  ;;  %vm831_vm9 = vcmp.ge.f32.partialorder %v1468_v61, 0.5  ;;  %v1184_v1 = vsel %vm830_vm7, 1.0, %v1282_v2 }
 0x1aa   : > { %v719_v3 = vsel %vm717_vm8, %v1418_v55, 4  ;;  %v720_v4 = vsel %vm372_vm0, %v718_v0, 2147483647  ;;  %v1185_v7 = vsel %vm831_vm9, 1.0, %v1282_v2  ;;  %v839_v8 = vsel %vm838_vm5, %v1184_v1, 0.0 }
 0x1ab   : > { %v721_v9 = vrot.slane %v720_v4, 4  ;;  %v730_v10 = vsel %vm372_vm0, %v719_v3, 2147483647  ;;  %v840_v11 = vsel %vm838_vm5, %v1185_v7, 0.0 }
 0x1ac   : > { %v731_v12 = vrot.slane %v730_v10, 4  ;;  %v841_v13 = vadd.f32 %v840_v11, %v839_v8 }
 0x1ad   : > { %vm722_vm10 = vcmp.lt.s32.totalorder %v720_v4, %v721_v9 }
 0x1ae   : > { %v723_v14 = vsel %vm722_vm10, %v720_v4, %v721_v9  ;;  %vm732_vm11 = vcmp.lt.s32.totalorder %v730_v10, %v731_v12  ;;  %842 = vadd.xlane.f32.xlu0 %v841_v13  ;;  %v561_v19 = vpop.f32.mrf.mxu1 }
 0x1af   : > { %v724_v15 = vrot.slane %v723_v14, 2  ;;  %v733_v16 = vsel %vm732_vm11, %v730_v10, %v731_v12  ;;  %v562_v21 = vadd.f32 %v561_v19, %v481_v17 }
 0x1b0   : > { %v734_v18 = vrot.slane %v733_v16, 2  ;;  %v563_v24 = vpop.f32.mrf.mxu1 }
 0x1b1   : > { %vm725_vm12 = vcmp.lt.s32.totalorder %v723_v14, %v724_v15  ;;  %v1178_v26 = vmul.f32 -1.442695, %v562_v21  ;;  %v564_v27 = vadd.f32 %v563_v24, %v481_v17  ;;  %v486_v21 = vpop.permute.xlu1 %485 }
 0x1b2   : > { %v726_v20 = vsel %vm725_vm12, %v723_v14, %v724_v15  ;;  %vm735_vm13 = vcmp.lt.s32.totalorder %v733_v16, %v734_v18  ;;  %vm833_vm12 = vcmp.lt.f32.partialorder %v1468_v61, 0.4 }
 0x1b3   : > { %v727_v22 = vrot.slane %v726_v20, 1  ;;  %v736_v23 = vsel %vm735_vm13, %v733_v16, %v734_v18  ;;  %v1179_v30 = vmul.f32 -1.442695, %v564_v27  ;;  %1245 = vpow2.f32 %v1178_v26 }
 0x1b4   : > { %v737_v25 = vrot.slane %v736_v23, 1 }
 0x1b5   : > { %vm728_vm14 = vcmp.lt.s32.totalorder %v726_v20, %v727_v22  ;;  %1247 = vpow2.f32 %v1179_v30 }
 0x1b6   : > { %vm738_vm15 = vcmp.lt.s32.totalorder %v736_v23, %v737_v25  ;;  %v729_v28 = vsel %vm728_vm14, %v726_v20, %v727_v22 }
 0x1b7   : > { %v739_v29 = vsel %vm738_vm15, %v736_v23, %v737_v25  ;;  %vm740_vm1 = vcmp.eq.s32.totalorder %v1418_v55, %v729_v28 }
 0x1b8   : > { %vm741_vm2 = vcmp.eq.s32.totalorder %v1418_v55, %v739_v29  ;;  %v1182_v31 = vsel %vm740_vm1, 1.0, %v1282_v2  ;;  %v567_v29 = vpop.f32.mrf.mxu1 }
 0x1b9   : > { %v1183_v32 = vsel %vm741_vm2, 1.0, %v1282_v2  ;;  %v746_v33 = vmul.f32 %v1182_v31, %v1420_v56  ;;  %v762_v34 = vmul.f32 %v1182_v31, %v1444_v6  ;;  %v778_v35 = vmul.f32 %v1182_v31, %v1422_v57 }
 0x1ba   : > { %v779_v36 = vmul.f32 %v1183_v32, %v1422_v57  ;;  %v794_v37 = vmul.f32 %v1182_v31, %v1442_v5  ;;  %v795_v43 = vmul.f32 %v1183_v32, %v1442_v5  ;;  %v747_v44 = vmul.f32 %v1183_v32, %v1420_v56 }
 0x1bb   : > { %v748_v38 = vsel %vm372_vm0, %v746_v33, 0.0  ;;  %v764_v39 = vsel %vm372_vm0, %v762_v34, 0.0  ;;  %v780_v40 = vsel %vm372_vm0, %v778_v35, 0.0  ;;  %v763_v45 = vmul.f32 %v1183_v32, %v1444_v6 }
 0x1bc   : > { %v749_v41 = vrot.slane %v748_v38, 4  ;;  %v765_v42 = vrot.slane %v764_v39, 4  ;;  %v781_v46 = vrot.slane %v780_v40, 4  ;;  %v787_v57 = vsel %vm372_vm0, %v779_v36, 0.0 }
 0x1bd   : > { %v788_v49 = vrot.slane %v787_v57, 4  ;;  %v796_v50 = vsel %vm372_vm0, %v794_v37, 0.0  ;;  %v803_v53 = vsel %vm372_vm0, %v795_v43, 0.0  ;;  %v814_v0 = vmul.f32 %v1182_v31, %v812_v54 }
 0x1be   : > { %v750_v47 = vadd.f32 %v749_v41, %v748_v38  ;;  %v766_v48 = vadd.f32 %v765_v42, %v764_v39  ;;  %v782_v51 = vadd.f32 %v781_v46, %v780_v40  ;;  %v797_v52 = vrot.slane %v796_v50, 4 }
 0x1bf   : > { %v755_v6 = vsel %vm372_vm0, %v747_v44, 0.0  ;;  %v771_v1 = vsel %vm372_vm0, %v763_v45, 0.0  ;;  %v789_v3 = vadd.f32 %v788_v49, %v787_v57  ;;  %v815_v8 = vmul.f32 %v1183_v32, %v812_v54 }
 0x1c0   : > { %v751_v58 = vrot.slane %v750_v47, 2  ;;  %v783_v59 = vrot.slane %v782_v51, 2  ;;  %v798_v5 = vadd.f32 %v797_v52, %v796_v50  ;;  %v767_v56 = vrot.slane %v766_v48, 2  ;;  %v1246_v12 = vpop.eup %1245 }
 0x1c1   : > { %v804_v10 = vrot.slane %v803_v53, 4  ;;  %v816_v14 = vsel %vm372_vm0, %v814_v0, 0.0  ;;  %v756_v17 = vrot.slane %v755_v6, 4  ;;  %v772_v18 = vrot.slane %v771_v1, 4 }
 0x1c2   : > { %v784_v4 = vadd.f32 %v783_v59, %v782_v51  ;;  %v799_v7 = vrot.slane %v798_v5, 2  ;;  %v752_v9 = vadd.f32 %v751_v58, %v750_v47  ;;  %v768_v11 = vadd.f32 %v767_v56, %v766_v48  ;;  %v1248_v26 = vpop.eup %1247 }
 0x1c3   : > { %v790_v19 = vrot.slane %v789_v3, 2  ;;  %v823_v22 = vsel %vm372_vm0, %v815_v8, 0.0  ;;  %v805_v27 = vadd.f32 %v804_v10, %v803_v53  ;;  %v817_v28 = vrot.slane %v816_v14, 4 }
 0x1c4   : > { %v800_v13 = vadd.f32 %v799_v7, %v798_v5  ;;  %v753_v15 = vrot.slane %v752_v9, 1  ;;  %v785_v16 = vrot.slane %v784_v4, 1  ;;  %v769_v20 = vrot.slane %v768_v11, 1 }
 0x1c5   : > { %v934_v31 = vrot.slane %v1431_v62, 2  ;;  %v578_v32 = vadd.f32 1.0, %v1246_v12  ;;  %v1509_v35 = vadd.f32 %v567_v29, %v486_v21  ;;  %v824_v36 = vrot.slane %v823_v22, 4 }
 0x1c6   : > { %v754_v23 = vadd.f32 %v753_v15, %v752_v9  ;;  %v786_v24 = vadd.f32 %v785_v16, %v784_v4  ;;  %v801_v25 = vrot.slane %v800_v13, 1  ;;  %v770_v30 = vadd.f32 %v769_v20, %v768_v11  ;;  %v569_v11 = vpop.f32.mrf.mxu1 }
 0x1c7   : > { %v757_v37 = vadd.f32 %v756_v17, %v755_v6  ;;  %v773_v38 = vadd.f32 %v772_v18, %v771_v1  ;;  %v791_v39 = vadd.f32 %v790_v19, %v789_v3  ;;  %v579_v40 = vadd.f32 1.0, %v1248_v26 }
 0x1c8   : > { %v802_v33 = vadd.f32 %v801_v25, %v800_v13  ;;  %v914_v34 = vsub.f32 %v786_v24, %v754_v23  ;;  %v806_v44 = vrot.slane %v805_v27, 2  ;;  %v818_v45 = vadd.f32 %v817_v28, %v816_v14 }
 0x1c9   : > { %v758_v46 = vrot.slane %v757_v37, 2  ;;  %v774_v57 = vrot.slane %v773_v38, 2  ;;  %1249 = vrcp.f32 %v578_v32  ;;  %v792_v53 = vrot.slane %v791_v39, 1 }
 0x1ca   : > { %v916_v41 = vsub.f32 %v802_v33, %v770_v30  ;;  %v918_v42 = vmul.f32 0.5, %v914_v34  ;;  %v926_v43 = vmax.f32 %v914_v34, 1.0  ;;  %1251 = vrcp.f32 %v579_v40 }
 0x1cb   : > { %v759_v51 = vadd.f32 %v758_v46, %v757_v37  ;;  %v775_v52 = vadd.f32 %v774_v57, %v773_v38  ;;  %v976_v5 = vrot.slane %v1509_v35, 5  ;;  %v819_v6 = vrot.slane %v818_v45, 2 }
 0x1cc   : > { %v920_v47 = vadd.f32 %v918_v42, %v754_v23  ;;  %v922_v48 = vmul.f32 0.5, %v916_v41  ;;  %v928_v49 = vmax.f32 %v916_v41, 1.0  ;;  %v950_v50 = vmul.f32 %v926_v43, %v1431_v62 }
 0x1cd   : > { %v760_v0 = vrot.slane %v759_v51, 1  ;;  %v776_v56 = vrot.slane %v775_v52, 1  ;;  %v825_v1 = vadd.f32 %v824_v36, %v823_v22  ;;  %v793_v8 = vadd.f32 %v792_v53, %v791_v39 }
 0x1ce   : > { %v924_v54 = vadd.f32 %v922_v48, %v770_v30  ;;  %v940_v58 = vsub.f32 %v920_v47, %v1431_v62  ;;  %v944_v59 = vmul.f32 %v928_v49, %v1431_v62  ;;  %1253 = vlog2.f32 %v950_v50 }
 0x1cf   : > { %v761_v7 = vadd.f32 %v760_v0, %v759_v51  ;;  %v807_v9 = vadd.f32 %v806_v44, %v805_v27  ;;  %v777_v12 = vadd.f32 %v776_v56, %v775_v52  ;;  %v820_v15 = vadd.f32 %v819_v6, %v818_v45 }
 0x1d0   : > { %v942_v3 = vmul.f32 %v940_v58, %v934_v31  ;;  %1255 = vlog2.f32 %v944_v59  ;;  %v930_v4 = vsub.f32 %v924_v54, %v1431_v62  ;;  %v826_v16 = vrot.slane %v825_v1, 2 }
 0x1d1   : > { %v808_v13 = vrot.slane %v807_v9, 1  ;;  %v915_v14 = vsub.f32 %v793_v8, %v761_v7  ;;  %v958_v18 = vrot.slane %v1509_v35, 3  ;;  %v1517_v22 = vadd.f32 %v569_v11, %v486_v21 }
 0x1d2   : > { %v980_v10 = vsub.f32 %v942_v3, %v976_v5  ;;  %v938_v17 = vmul.f32 %v934_v31, %v930_v4  ;;  %v821_v25 = vrot.slane %v820_v15, 1  ;;  %v827_v26 = vadd.f32 %v826_v16, %v825_v1 }
 0x1d3   : > { %v809_v19 = vadd.f32 %v808_v13, %v807_v9  ;;  %v919_v20 = vmul.f32 0.5, %v915_v14  ;;  %v927_v23 = vmax.f32 %v915_v14, 1.0  ;;  %v935_v28 = vrot.slane %v1436_v63, 2 }
 0x1d4   : > { %v982_v24 = vand.u32 2147483647, %v980_v10  ;;  %v962_v30 = vsub.f32 %v938_v17, %v958_v18  ;;  %v977_v35 = vrot.slane %v1517_v22, 5  ;;  %v822_v40 = vadd.f32 %v821_v25, %v820_v15 }
 0x1d5   : > { %v917_v62 = vsub.f32 %v809_v19, %v777_v12  ;;  %v921_v27 = vadd.f32 %v919_v20, %v761_v7  ;;  %v951_v31 = vmul.f32 %v927_v23, %v1436_v63  ;;  %v828_v41 = vrot.slane %v827_v26, 1 }
 0x1d6   : > { %v1250_v29 = vpop.eup %1249  ;;  %v986_v36 = vmul.f32 4.5, %v982_v24  ;;  %v964_v45 = vand.u32 2147483647, %v962_v30  ;;  %v959_v58 = vrot.slane %v1517_v22, 3  ;;  %v1199_v59 = vtrunc.f32 %v822_v40 }
 0x1d7   : > { %v923_v32 = vmul.f32 0.5, %v917_v62  ;;  %v929_v33 = vmax.f32 %v917_v62, 1.0  ;;  %v941_v34 = vsub.f32 %v921_v27, %v1436_v63  ;;  %v1252_v21 = vpop.eup %1251  ;;  %1257 = vlog2.f32 %v951_v31 }
 0x1d8   : > { %v584_v57 = vmax.f32 %v1250_v29, 0.0001  ;;  %v585_v48 = vmax.f32 %v1252_v21, 0.0001  ;;  %v988_v49 = vmul.f32 %v986_v36, %v982_v24  ;;  %v829_v52 = vadd.f32 %v828_v41, %v827_v26 }
 0x1d9   : > { %v925_v37 = vadd.f32 %v923_v32, %v777_v12  ;;  %v945_v38 = vmul.f32 %v929_v33, %v1436_v63  ;;  %v943_v42 = vmul.f32 %v941_v34, %v935_v28  ;;  %v968_v0 = vmul.f32 4.5, %v964_v45 }
 0x1da   : > { %v1188_v56 = vadd.f32 -0.055555556, %v982_v24  ;;  %v1528_v1 = vmin.f32 %v584_v57, 0.9999  ;;  %vm984_vm0 = vcmp.le.f32.partialorder %v982_v24, 0.11111111  ;;  %v1200_v9 = vcvt.f32.s32 %v1199_v59 }
 0x1db   : > { %v1254_v39 = vpop.eup %1253  ;;  %v931_v46 = vsub.f32 %v925_v37, %v1436_v63  ;;  %1259 = vlog2.f32 %v945_v38  ;;  %v981_v51 = vsub.f32 %v943_v42, %v977_v35  ;;  %v1530_v3 = vmin.f32 %v585_v48, 0.9999 }
 0x1dc   : > { %v953_v44 = vmul.f32 0.6931472, %v1254_v39  ;;  %v1201_v10 = vtrunc.f32 %v829_v52  ;;  %v970_v11 = vmul.f32 %v968_v0, %v964_v45  ;;  %1261 = vlog2.f32 %v1528_v1 }
 0x1dd   : > { %v1256_v43 = vpop.eup %1255  ;;  %v939_v54 = vmul.f32 %v935_v28, %v931_v46  ;;  %v983_v4 = vand.u32 2147483647, %v981_v51  ;;  %1263 = vlog2.f32 %v1530_v3  ;;  %v1186_v16 = vadd.f32 -0.055555556, %v964_v45 }
 0x1de   : > { %v947_v47 = vmul.f32 0.6931472, %v1256_v43  ;;  %v1024_v50 = vsub.f32 %v953_v44, %v976_v5  ;;  %v992_v5 = vsel %vm984_vm0, %v988_v49, %v1188_v56  ;;  %vm966_vm6 = vcmp.le.f32.partialorder %v964_v45, 0.11111111 }
 0x1df   : > { %v963_v8 = vsub.f32 %v939_v54, %v959_v58  ;;  %v996_v15 = vrot.slane %v992_v5, 7  ;;  %v987_v17 = vmul.f32 4.5, %v983_v4  ;;  %v867_v23 = vsub.f32 1.0, %v1528_v1 }
 0x1e0   : > { %v1002_v53 = vsub.f32 %v947_v47, %v958_v18  ;;  %v1026_v6 = vand.u32 2147483647, %v1024_v50  ;;  %v974_v62 = vsel %vm966_vm6, %v970_v11, %v1186_v16  ;;  %v868_v26 = vsub.f32 1.0, %v1530_v3 }
 0x1e1   : > { %v965_v19 = vand.u32 2147483647, %v963_v8  ;;  %v1202_v28 = vcvt.f32.s32 %v1201_v10  ;;  %v1000_v29 = vadd.f32 %v996_v15, %v974_v62  ;;  %vm853_vm8 = vcmp.eq.s32.totalorder %v1418_v55, %v1200_v9 }
 0x1e2   : > { %v1004_v63 = vand.u32 2147483647, %v1002_v53  ;;  %v1030_v12 = vmul.f32 4.5, %v1026_v6  ;;  %v989_v33 = vmul.f32 %v987_v17, %v983_v4  ;;  %v1192_v34 = vadd.f32 -0.055555556, %v1026_v6 }
 0x1e3   : > { %v969_v21 = vmul.f32 4.5, %v965_v19  ;;  %v1189_v36 = vadd.f32 -0.055555556, %v983_v4  ;;  %vm1028_vm10 = vcmp.le.f32.partialorder %v1026_v6, 0.11111111  ;;  %1265 = vlog2.f32 %v867_v23 }
 0x1e4   : > { %v1008_v7 = vmul.f32 4.5, %v1004_v63  ;;  %v1190_v14 = vadd.f32 -0.055555556, %v1004_v63  ;;  %vm1006_vm4 = vcmp.le.f32.partialorder %v1004_v63, 0.11111111  ;;  %v1258_v18 = vpop.eup %1257  ;;  %v1032_v25 = vmul.f32 %v1030_v12, %v1026_v6 }
 0x1e5   : > { %v955_v24 = vmul.f32 0.6931472, %v1258_v18  ;;  %1267 = vlog2.f32 %v868_v26  ;;  %vm985_vm11 = vcmp.le.f32.partialorder %v983_v4, 0.11111111  ;;  %vm854_vm13 = vcmp.eq.s32.totalorder %v1418_v55, %v1202_v28 }
 0x1e6   : > { %v1010_v13 = vmul.f32 %v1008_v7, %v1004_v63  ;;  %v1036_v39 = vsel %vm1028_vm10, %v1032_v25, %v1192_v34  ;;  %v993_v43 = vsel %vm985_vm11, %v989_v33, %v1189_v36  ;;  %v855_v22 = vsel %vm853_vm8, 1.0, %v1282_v2 }
 0x1e7   : > { %v1025_v31 = vsub.f32 %v955_v24, %v977_v35  ;;  %v1040_v35 = vrot.slane %v1036_v39, 1  ;;  %v1289_v44 = vmov -1.0   ;;  %v971_v46 = vmul.f32 %v969_v21, %v965_v19 }
 0x1e8   : > { %v1014_v20 = vsel %vm1006_vm4, %v1010_v13, %v1190_v14  ;;  %v1260_v27 = vpop.eup %1259  ;;  %v857_v45 = vsel %vm832_vm3, 0.0, %v1289_v44  ;;  %v856_v48 = vsel %vm854_vm13, 1.0, %v1282_v2  ;;  %v997_v49 = vrot.slane %v993_v43, 7 }
 0x1e9   : > { %v1018_v30 = vrot.slane %v1014_v20, 2  ;;  %v949_v32 = vmul.f32 0.6931472, %v1260_v27  ;;  %v1027_v38 = vand.u32 2147483647, %v1025_v31  ;;  %v858_v51 = vsel %vm833_vm12, 0.0, %v1289_v44  ;;  %v1262_v53 = vpop.eup %1261 }
 0x1ea   : > { %v861_v52 = vsel %vm830_vm7, %v855_v22, %v857_v45  ;;  %v1187_v54 = vadd.f32 -0.055555556, %v965_v19  ;;  %v1264_v0 = vpop.eup %1263  ;;  %vm967_vm14 = vcmp.le.f32.partialorder %v965_v19, 0.11111111  ;;  %v862_v56 = vsel %vm831_vm9, %v856_v48, %v858_v51 }
 0x1eb   : > { %v1003_v37 = vsub.f32 %v949_v32, %v959_v58  ;;  %v1022_v40 = vadd.f32 %v1018_v30, %v1000_v29  ;;  %v1031_v42 = vmul.f32 4.5, %v1027_v38  ;;  %v1193_v59 = vadd.f32 -0.055555556, %v1027_v38 }
 0x1ec   : > { %vm1029_vm1 = vcmp.le.f32.partialorder %v1027_v38, 0.11111111  ;;  %v975_v6 = vsel %vm967_vm14, %v971_v46, %v1187_v54  ;;  %vm863_vm2 = vcmp.eq.f32.partialorder %v861_v52, 1.0  ;;  %vm864_vm0 = vcmp.eq.f32.partialorder %v862_v56, 1.0 }
 0x1ed   : > { %v1005_v41 = vand.u32 2147483647, %v1003_v37  ;;  %v1033_v47 = vmul.f32 %v1031_v42, %v1027_v38  ;;  %v1044_v50 = vadd.f32 %v1040_v35, %v1022_v40  ;;  %v1001_v4 = vadd.f32 %v997_v49, %v975_v6 }
 0x1ee   : > { %v869_v10 = vsel %vm863_vm2, %v867_v23, %v1528_v1  ;;  %v876_v11 = vmul.f32 0.6931472, %v1262_v53  ;;  %v870_v14 = vsel %vm864_vm0, %v868_v26, %v1530_v3  ;;  %v878_v15 = vmul.f32 0.6931472, %v1264_v0 }
 0x1ef   : > { %v1009_v57 = vmul.f32 4.5, %v1005_v41  ;;  %v1191_v58 = vadd.f32 -0.055555556, %v1005_v41  ;;  %vm1007_vm15 = vcmp.le.f32.partialorder %v1005_v41, 0.11111111  ;;  %v1037_v63 = vsel %vm1029_vm1, %v1033_v47, %v1193_v59 }
 0x1f0   : > { %v1046_v7 = vsel %vm830_vm7, %v1044_v50, 0.0  ;;  %v1041_v9 = vrot.slane %v1037_v63, 1  ;;  %v1266_v12 = vpop.eup %1265  ;;  %v1290_v18 = vmov 0.75   ;;  %v881_v20 = vsub.f32 1.0, %v861_v52 }
 0x1f1   : > { %v1011_v55 = vmul.f32 %v1009_v57, %v1005_v41  ;;  %v1050_v13 = vrot.slane %v1046_v7, 5  ;;  %v865_v19 = vsel %vm863_vm2, 0.25, %v1290_v18  ;;  %v884_v24 = vmul.f32 0.6931472, %v1266_v12 }
 0x1f2   : > { %v1268_v16 = vpop.eup %1267  ;;  %v866_v60 = vsel %vm864_vm0, 0.25, %v1290_v18  ;;  %v871_v62 = vmul.f32 %v869_v10, %v865_v19  ;;  %v882_v25 = vsub.f32 1.0, %v862_v56  ;;  %v879_v23 = vmul.f32 %v876_v11, %v861_v52 }
 0x1f3   : > { %v1015_v2 = vsel %vm1007_vm15, %v1011_v55, %v1191_v58  ;;  %v886_v27 = vmul.f32 0.6931472, %v1268_v16  ;;  %v872_v1 = vmul.f32 %v870_v14, %v866_v60  ;;  %v887_v29 = vmul.f32 %v884_v24, %v881_v20 }
 0x1f4   : > { %v1019_v5 = vrot.slane %v1015_v2, 2  ;;  %v1054_v3 = vsel %vm838_vm5, %v1050_v13, 0.0  ;;  %v880_v26 = vmul.f32 %v878_v15, %v862_v56  ;;  %v873_v36 = vmul.f32 %v871_v62, %v869_v10 }
 0x1f5   : > { %v888_v32 = vmul.f32 %v886_v27, %v882_v25  ;;  %v889_v33 = vadd.f32 %v887_v29, %v879_v23  ;;  %v874_v38 = vmul.f32 %v872_v1, %v870_v14  ;;  %vm893_vm7 = vcmp.ne.f32.partialorder %v861_v52, -1.0 }
 0x1f6   : > { %v1023_v8 = vadd.f32 %v1019_v5, %v1001_v4 }
 0x1f7   : > { %v890_v34 = vadd.f32 %v888_v32, %v880_v26  ;;  %v891_v37 = vsub.f32 0.0, %v889_v33 }
 0x1f8   : > { %v1045_v17 = vadd.f32 %v1041_v9, %v1023_v8 }
 0x1f9   : > { %v892_v39 = vsub.f32 0.0, %v890_v34  ;;  %v895_v61 = vmul.f32 %v891_v37, %v873_v36 }
 0x1fa   : > { %v1047_v28 = vsel %vm831_vm9, %v1045_v17, 0.0  ;;  %vm894_vm9 = vcmp.ne.f32.partialorder %v862_v56, -1.0 }
 0x1fb   : > { %v1051_v30 = vrot.slane %v1047_v28, 5  ;;  %v896_v40 = vmul.f32 %v892_v39, %v874_v38  ;;  %v897_v41 = vsel %vm893_vm7, %v895_v61, 0.0 }
 0x1fd   : > { %v1055_v31 = vsel %vm838_vm5, %v1051_v30, 0.0  ;;  %v898_v42 = vsel %vm894_vm9, %v896_v40, 0.0 }
 0x1fe   : > { %v1056_v21 = vadd.f32 %v1055_v31, %v1054_v3  ;;  %v899_v43 = vadd.f32 %v898_v42, %v897_v41 }
 0x200   : > { %1057 = vadd.xlane.f32.xlu0 %v1056_v21  ;;  %900 = vadd.xlane.f32.xlu1 %v899_v43 }
 0x237   : > { %v843_v22 = vpop.xlane.xlu0 %842 }
 0x238   : > { %v844_v35 = vrot.slane %v843_v22, 4 }
 0x23a   : > { %v845_v44 = vadd.f32 %v844_v35, %v843_v22 }
 0x23c   : > { %v846_v45 = vrot.slane %v845_v44, 2 }
 0x23e   : > { %v847_v46 = vadd.f32 %v846_v45, %v845_v44 }
 0x240   : > { %v848_v57 = vrot.slane %v847_v46, 1 }
 0x242   : > { %v849_v47 = vadd.f32 %v848_v57, %v847_v46 }
 0x244   : > { %1197 = vpush %v849_v47 }
 0x275   : > { %s1560_s9 = spop %1197 }
 0x276   : > { %s1067_s10 = smul.f32 4.0, %s1560_s9  ;;  %s909_s12 = smax.f32 %s1291_s11, %s1560_s9 }
 0x277   : > { %v910_v50 = vstv %s909_s12  ;;  %p1066_p4 = scmp.gt.f32.partialorder %s1560_s9, 0.0 }
 0x278   : > { %s1068_s13 = smax.f32 %s1291_s11, %s1067_s10  ;;  %1269 = vrcp.f32 %v910_v50 }
 0x279   : > { %v1069_v52 = vstv %s1068_s13 }
 0x27a   : > { %1271 = vrcp.f32 %v1069_v52 }
 0x285   : > { %v1270_v4 = vpop.eup %1269 }
 0x287   : > { %v1272_v7 = vpop.eup %1271 }
 0x289   : > { %v1058_v48 = vpop.xlane.xlu0 %1057  ;;  %v901_v53 = vpop.xlane.xlu1 %900 }
 0x28a   : > { %v1059_v49 = vrot.slane %v1058_v48, 4  ;;  %v902_v55 = vrot.slane %v901_v53, 4 }
 0x28c   : > { %v1060_v51 = vadd.f32 %v1059_v49, %v1058_v48  ;;  %v903_v58 = vadd.f32 %v902_v55, %v901_v53 }
 0x28e   : > { %v1061_v54 = vrot.slane %v1060_v51, 2  ;;  %v904_v0 = vrot.slane %v903_v58, 2 }
 0x290   : > { %v1062_v59 = vadd.f32 %v1061_v54, %v1060_v51  ;;  %v905_v56 = vadd.f32 %v904_v0, %v903_v58 }
 0x292   : > { %v906_v6 = vrot.slane %v905_v56, 1  ;;  %v1063_v2 = vrot.slane %v1062_v59, 1 }
 0x294   : > { %v907_v63 = vadd.f32 %v906_v6, %v905_v56  ;;  %v1064_v5 = vadd.f32 %v1063_v2, %v1062_v59 }
 0x296   : > { %1203 = vpush %v907_v63 }
 0x297   : > { %1205 = vpush %v1270_v4 }
 0x298   : > { %1207 = vpush %v1064_v5 }
 0x299   : > { %1209 = vpush %v1272_v7 }
 0x2c7   : > { %s1204_s14 = spop %1203 }
 0x2c8   : > { %s1206_s18 = spop %1205 }
 0x2c9   : > { %s913_s19 = smul.f32 %s1206_s18, %s1204_s14  ;;  %s1208_s20 = spop %1207 }
 0x2ca   : > { %s1210_s21 = spop %1209 }
 0x2cb   : > { %v1074_v8 = vstv %s913_s19  ;;  %s1072_s22 = smul.f32 %s1210_s21, %s1208_s20 }
 0x2cc   : > { %1075 = vst [vmem:[%s324_s17] sm:$0x1] %v1074_v8 }
 0x2cd   : > { %s1588_s22 = smov (!%p1066_p4, %s1072_s22), 0.0 }
 0x2ce   : > { %v1076_v9 = vstv %s1588_s22 }
 0x2cf   : > { %1077 = vst [vmem:[%s327_s25] sm:$0x1] %v1076_v9 }
 0x2d0 PF: > { %s19_s27 = sadd.s32 1, %s1279_s27  }
 0x2d1   : > { %p16_p5 = scmp.ge.s32.totalorder %s19_s27, 4  }
 0x2d3   :  { %18 = sbr.rel (!%p16_p5) target bundleno = 1 (0x1), region = 93 }

</bundles_post_ra>
